<compile_context>
chip_gen: v7x
topology: tpu7x:2x2x1
jax: 0.10.0
libtpu: 0.0.40
codegen_flags: <defaults>
</compile_context>

<pallas_src>
import jax
import jax.numpy as jnp
from jax.experimental import pallas as pl
from jax.experimental.pallas import tpu as pltpu


def _matmul_panel_kernel(a_ref, w_ref, o_ref):
    # a_ref: (Mp, Cp) bf16 activation slab, resident across the grid.
    # w_ref: (Cp, tn) bf16 column panel of the (transposed) conv weight.
    # o_ref: (Mp, tn) f32 output tile.
    o_ref[...] = jnp.dot(a_ref[...], w_ref[...],
                         preferred_element_type=jnp.float32)


def _round_up(x, m):
    return ((x + m - 1) // m) * m


def fused_forward(x278, x265, gamma, beta, conv_w, *, eps=1e-5):
    """x278, x265: (N, C, H, W) float32.
    conv_w: (Cout, Cin) or (Cout, Cin, 1, 1) float32 (1x1 kernel)."""
    N, C, H, W = x278.shape
    Cout = conv_w.shape[0]
    M = N * H * W

    # --- NCHW -> (M, C) ---
    def to_mc(x):
        return jnp.transpose(x, (0, 2, 3, 1)).reshape(M, C)

    x278_mc = to_mc(x278.astype(jnp.float32))
    x265_mc = to_mc(x265.astype(jnp.float32))

    # --- BatchNorm2d training-mode batch stats (two-pass, f32) ---
    mean = jnp.mean(x278_mc, axis=0)                              # (C,)
    var = jnp.mean(jnp.square(x278_mc - mean[None, :]), axis=0)   # biased var
    inv_std = jax.lax.rsqrt(var + eps)
    scale = gamma * inv_std                                       # (C,)
    bias = beta - mean * scale                                    # (C,)

    # --- BN + add + ReLU prologue, computed ONCE in f32 (hoisted out of the
    #     kernel); only the result is rounded to bf16 for the MXU. ---
    a_f32 = jnp.maximum(x278_mc * scale[None, :] + bias[None, :] + x265_mc, 0.0)
    a = a_f32.astype(jnp.bfloat16)                                # (M, C)

    # --- weight: (Cout, Cin) -> (Cin, Cout), bf16 ---
    wt = conv_w.reshape(Cout, C).T.astype(jnp.bfloat16)           # (Cin, Cout)

    # --- Pad to tile-aligned sizes.
    #     Mp: multiple of 16 (bf16 LHS sublane packing; also covers f32 out).
    #     Cp: multiple of 128 (lane-aligned K; zeros in both operands are
    #         result-preserving).
    #     cout_pad: multiple of tn (zero output columns, sliced off below). ---
    tn = 512 if Cout >= 512 else 128
    Mp = _round_up(M, 16)
    Cp = _round_up(C, 128)
    cout_pad = _round_up(Cout, tn)

    if (Mp, Cp) != (M, C):
        a = jnp.pad(a, ((0, Mp - M), (0, Cp - C)))
    if (Cp, cout_pad) != (C, Cout):
        wt = jnp.pad(wt, ((0, Cp - C), (0, cout_pad - Cout)))

    grid = (cout_pad // tn,)

    out_mc = pl.pallas_call(
        _matmul_panel_kernel,
        out_shape=jax.ShapeDtypeStruct((Mp, cout_pad), jnp.float32),
        grid_spec=pltpu.PrefetchScalarGridSpec(
            num_scalar_prefetch=0,
            grid=grid,
            in_specs=[
                # Activation slab: constant index_map -> fetched once, stays
                # resident in VMEM for the whole grid.
                pl.BlockSpec((Mp, Cp), lambda j: (0, 0)),
                # Weight column panel, streamed across the grid.
                pl.BlockSpec((Cp, tn), lambda j: (0, j)),
            ],
            out_specs=pl.BlockSpec((Mp, tn), lambda j: (0, j)),
        ),
        compiler_params=pltpu.CompilerParams(
            dimension_semantics=("parallel",),   # shard Cout tiles (v7x megacore)
            vmem_limit_bytes=32 * 1024 * 1024,
        ),
    )(a, wt)

    # --- (Mp, cout_pad) -> (M, Cout) -> NCHW ---
    out = out_mc[:M, :Cout].reshape(N, H, W, Cout).transpose(0, 3, 1, 2)
    return out


def reference_forward(x278, x265, gamma, beta, conv_w, eps=1e-5):
    mean = jnp.mean(x278, axis=(0, 2, 3), keepdims=True)
    var = jnp.mean(jnp.square(x278 - mean), axis=(0, 2, 3), keepdims=True)
    xhat = (x278 - mean) / jnp.sqrt(var + eps)
    bn = xhat * gamma[None, :, None, None] + beta[None, :, None, None]
    a = jnp.maximum(x265 + bn, 0.0)
    cw = conv_w.reshape(conv_w.shape[0], -1)
    return jnp.einsum('nchw,oc->nohw', a, cw)


if __name__ == "__main__":
    # Small stand-in for the original (1, 2904, 14, 14): keeps M = 196 (not a
    # multiple of 8/16) and C = 296 (not a multiple of 128) to exercise the
    # same padding/alignment path the real RegNet shape needs.
    N, C, H, W = 1, 296, 14, 14
    key = jax.random.PRNGKey(0)
    k1, k2, k3, k4, k5 = jax.random.split(key, 5)

    x278 = jax.random.normal(k1, (N, C, H, W), dtype=jnp.float32)
    x265 = jax.random.normal(k2, (N, C, H, W), dtype=jnp.float32)

    gamma = 1.0 + 0.1 * jax.random.normal(k3, (C,), dtype=jnp.float32)
    beta = 0.1 * jax.random.normal(k4, (C,), dtype=jnp.float32)
    conv_w = jax.random.normal(k5, (C, C), dtype=jnp.float32) * (1.0 / jnp.sqrt(C))

    out = jax.block_until_ready(fused_forward(x278, x265, gamma, beta, conv_w))
    ref = reference_forward(x278, x265, gamma, beta, conv_w)

    assert out.shape == (N, C, H, W)
    max_err = jnp.max(jnp.abs(out - ref))
    assert jnp.allclose(out, ref, atol=5e-2, rtol=5e-2), f"max abs err {max_err}"

    print("KERNEL_OK")
</pallas_src>

<mosaic_0001>
module attributes {stable_mosaic.version = 11 : i64} {
  func.func @_matmul_panel_kernel(%arg0: i32, %arg1: memref<208x384xbf16, #tpu.memory_space<vmem>>, %arg2: memref<384x128xbf16, #tpu.memory_space<vmem>>, %arg3: memref<208x128xf32, #tpu.memory_space<vmem>>) attributes {dimension_semantics = [#tpu.dimension_semantics<parallel>], iteration_bounds = array<i64: 3>, scalar_prefetch = 0 : i64, scratch_operands = 0 : i64, tpu.core_type = #tpu.core_type<tc>, window_params = [{pipeline_mode = #tpu.pipeline_mode<synchronous>, transform_indices = @transform_0, window_bounds = array<i64: 208, 384>}, {transform_indices = @transform_1, window_bounds = array<i64: 384, 128>}, {transform_indices = @transform_2, window_bounds = array<i64: 208, 128>}]} {
    %c0 = arith.constant 0 : index
    %c0_0 = arith.constant 0 : index
    %0 = vector.load %arg1[%c0, %c0_0] : memref<208x384xbf16, #tpu.memory_space<vmem>>, vector<208x384xbf16>
    %c0_1 = arith.constant 0 : index
    %c0_2 = arith.constant 0 : index
    %1 = vector.load %arg2[%c0_1, %c0_2] : memref<384x128xbf16, #tpu.memory_space<vmem>>, vector<384x128xbf16>
    %cst = arith.constant dense<0.000000e+00> : vector<208x128xf32>
    %2 = tpu.matmul %0, %1, %cst {dimension_numbers = #tpu.dot_dimension_numbers<[1], [0], [0], [1], [0, 0, 1, 1], [], []>} : vector<208x384xbf16>, vector<384x128xbf16>, vector<208x128xf32> -> vector<208x128xf32>
    %c0_3 = arith.constant 0 : index
    %c0_4 = arith.constant 0 : index
    %3 = vector.load %arg3[%c0_3, %c0_4] : memref<208x128xf32, #tpu.memory_space<vmem>>, vector<208x128xf32>
    tpu.vector_store %arg3[%c0_3, %c0_4], %2 {strides = array<i32>} : memref<208x128xf32, #tpu.memory_space<vmem>>, vector<208x128xf32>,
    return
  }
  func.func @transform_0(%arg0: i32) -> (i32, i32) {
    %c0_i32 = arith.constant 0 : i32
    %c0_i32_0 = arith.constant 0 : i32
    %c0_i32_1 = arith.constant 0 : i32
    return %c0_i32, %c0_i32_0 : i32, i32
  }
  func.func @transform_1(%arg0: i32) -> (i32, i32) {
    %c0_i32 = arith.constant 0 : i32
    %c0_i32_0 = arith.constant 0 : i32
    return %c0_i32, %arg0 : i32, i32
  }
  func.func @transform_2(%arg0: i32) -> (i32, i32) {
    %c0_i32 = arith.constant 0 : i32
    %c0_i32_0 = arith.constant 0 : i32
    return %c0_i32, %arg0 : i32, i32
  }
}

</mosaic_0001>

<bundles_post_ra>
// kernel: tpu_custom_call.1
= control target key start
LH: loop header
LB: loop body
LE: loop exit
PB: predicated region body
PF: predicated region fallthrough
CT: control target
= control target key end

     0   :  { %7 = vsyncpa [#allocation3], 0  ;;  %s1876_s0 = inlined_call_operand.hbm [shape: bf16[208,384], index: 0, kind: input, shape index: {}]   ;;  %s1877_s1 = inlined_call_operand.hbm [shape: bf16[384,384], index: 1, kind: input, shape index: {}]   ;;  %s1878_s2 = inlined_call_operand.hbm [shape: f32[208,384], index: 2, kind: output, shape index: {}]  }
   0x1   :  { %8 = vsyncpa [#allocation6], 0 }
   0x2   :  { %10 = vsyncpa [#allocation6 + $0x1], 0 }
   0x3   :  { %11 = vsyncpa [#allocation4], 0 }
   0x4   :  { %13 = vsyncpa [#allocation4 + $0x1], 0  ;;  %s1585_s9 = smov 0   ;;  %s1587_s10 = smov 0  }
   0x5   :  { %s1589_s11 = smov 0   ;;  %s1591_s12 = smov 0  }
   0x6 LB: > { %s1606_s13 = sadd.s32 4294967295, %s1556_s12   ;;  %s1027_s14 = sadd.s32 4294967294, %s1556_s12   ;;  %s1556_s12 = sphi %s1591_s12, %s1901_s12   ;;  %s1552_s11 = sphi %s1589_s11, %s1900_s11   ;;  %s1548_s10 = sphi %s1587_s10, %s1899_s10   ;;  %s1544_s9 = sphi %s1585_s9, %s1898_s9  }
   0x7   : > { %s1610_s15 = sadd.s32 1, %s1556_s12   ;;  %s47_s16 = sadd.s32 1, %s1552_s11 }
   0x8   : > { %s44_s17 = ssub.s32 %s1556_s12, %s1610_s15  ;;  %p54_p0 = scmp.ne.s32.totalorder %s1552_s11, %s1548_s10 }
   0x9   : > { %p45_p1 = scmp.eq.s32.totalorder %s44_s17, 0  ;;  %p55_p2 = scmp.eq.s32.totalorder %s1556_s12, 0 }
   0xa   : > { %p60_p3 = scmp.ne.s32.totalorder %s1548_s10, %s1544_s9  ;;  %p1879_p4 = scmp.eq.s32.totalorder %s1606_s13, 0 }
   0xb   : > { %s1622_s18 = scalar_select %p45_p1, %s1552_s11, %s47_s16  }
   0xc   : > { %p1624_p5 = por %p55_p2, %p54_p0  ;;  %p1630_p6 = por %p1879_p4, %p60_p3 }
   0xd   : > { %p84_p7 = scmp.eq.s32.totalorder %s1606_s13, 2  ;;  %p90_p8 = scmp.eq.s32.totalorder %s1027_s14, 2 }
   0xe   : > { %s1883_s19 = scalar_select %p1624_p5, 1, 0 }
   0xf   : > { %s1884_s20 = scalar_select %p1630_p6, 1, 0 }
  0x10   : > { %p1028_p9 = scmp.ge.s32.totalorder %s1556_s12, 1  ;;  %p97_p10 = scmp.lt.s32.totalorder %s1556_s12, 4 }
  0x11   : > { %p1637_p11 = por %p84_p7, %p54_p0  ;;  %p1641_p12 = por %p90_p8, %p60_p3 }
  0x12   : > { %p1645_p13 = pnand %p1028_p9, %p97_p10  ;;  %s1558_s24 = smov [#allocation2]  }
  0x13   : > { %s1885_s21 = scalar_select %p1637_p11, 1, 0 }
  0x14   : > { %s1886_s22 = scalar_select %p1641_p12, 1, 0 }
  0x15   : > { %s1887_s23 = scalar_select %p1645_p13, 1, 0 }
  0x16   : > { %p1294_p1 = pneg %p1645_p13  ;;  %s109_s25 = sshll.u32 %s1558_s24, 4  ;;  %s110_s25 = int_to_ptr.vmem [resolvable:$true] %s109_s25 }
  0x17   : > { %s123_s27 = sand.u32 1, %s1552_s11   ;;  %s1428_s30 = scalar_lea.hbm %s1876_s0, 4992 }
  0x18   : > { %p1653_p2 = pnand %p1294_p1, %p1879_p4  ;;  %p1429_p3 = scmp.ne.s32.totalorder %s1876_s0, %s1428_s30 }
  0x19   : > { %p1435_p10 = scmp.lt.u32.totalorder %s1428_s30, %s1876_s0 }
  0x1a   : > { %p1430_p7 = pneg %p1653_p2 }
  0x1c   : > { %p1431_p8 = pnand %p1430_p7, %p1429_p3 }
  0x1e   : > { %p1432_p9 = pneg %p1431_p8 }
  0x20   : > { %p1437_p1 = pnand %p1435_p10, %p1432_p9 }
  0x22   : > { %1440 = shalt.err (!%p1437_p1)
}
  0x23   : > { %s1441_s7 = scalar_lea.vmem %s110_s25, 4992  ;;  %p1449_p11 = scmp.lt.s32.totalorder %s110_s25, %s110_s25 }
  0x24   : > { %p1442_p4 = scmp.ne.s32.totalorder %s110_s25, %s1441_s7  ;;  %p1450_p6 = scmp.lt.s32.totalorder %s1441_s7, %s1441_s7 }
  0x26   : > { %p1444_p0 = pnand %p1442_p4, %p1430_p7  ;;  %p1451_p13 = por %p1450_p6, %p1449_p11 }
  0x28   : > { %p1445_p12 = pneg %p1444_p0 }
  0x2a   : > { %p1452_p5 = pnand %p1451_p13, %p1445_p12 }
  0x2c   : > { %1455 = shalt.err (!%p1452_p5)
}
  0x2d   : > { %s1559_s8 = smov 192   ;;  %s1560_s14 = smov 12  }
  0x2e   : > { %1297 = dma.hbm_to_vmem [thread:$0]  (!%p1653_p2), %s1876_s0, 4992, %s110_s25, [#allocation3], %s1559_s8, %s1559_s8, %s1560_s14  }
  0x2f   : > { %p1889_p4 = scmp.ne.s32.totalorder %s1883_s19, 0  ;;  %p1890_p0 = scmp.lt.s32.totalorder %s1556_s12, 3 }
  0x30   : > { %s1283_s28 = smul.u32 192, %s123_s27  ;;  %s1031_s29 = sshll.u32 %s1556_s12, 6 }
  0x31   : > { %p1681_p3 = pnand %p1890_p0, %p1889_p4  ;;  %s1689_s26 = scalar_lea.hbm %s1877_s1, %s1031_s29 }
  0x32   : > { %s127_s25 = scalar_lea.vmem [#allocation5], %s1283_s28  ;;  %s1693_s4 = scalar_lea.sflag [#allocation6], %s123_s27 }
  0x33   : > { %s133_s19 = sshll.u32 %s127_s25, 4  ;;  %s1456_s5 = scalar_lea.hbm %s1689_s26, 3072  ;;  %s1691_s19 = int_to_ptr.vmem [resolvable:$true] %s133_s19 }
  0x34   : > { %p1457_p5 = scmp.ne.s32.totalorder %s1689_s26, %s1456_s5  ;;  %p1458_p6 = pneg %p1681_p3 }
  0x35   : > { %s1461_s14 = scalar_lea.hbm %s1877_s1, 9216  ;;  %p1462_p13 = scmp.lt.u32.totalorder %s1689_s26, %s1877_s1 }
  0x36   : > { %p1459_p11 = pnand %p1458_p6, %p1457_p5  ;;  %p1463_p2 = scmp.lt.u32.totalorder %s1461_s14, %s1456_s5 }
  0x37   : > { %p1465_p8 = scmp.lt.u32.totalorder %s1456_s5, %s1689_s26 }
  0x38   : > { %p1460_p12 = pneg %p1459_p11  ;;  %p1464_p7 = por %p1463_p2, %p1462_p13 }
  0x3a   : > { %p1466_p9 = por %p1465_p8, %p1464_p7 }
  0x3c   : > { %p1467_p10 = pnand %p1466_p9, %p1460_p12 }
  0x3e   : > { %1470 = shalt.err (!%p1467_p10)
}
  0x3f   : > { %s1471_s27 = scalar_lea.vmem %s1691_s19, 3072  ;;  %s1561_s28 = smov [#allocation5]  }
  0x40   : > { %p1472_p1 = scmp.ne.s32.totalorder %s1691_s19, %s1471_s27  ;;  %s1476_s29 = sshll.u32 %s1561_s28, 4  ;;  %s1477_s29 = int_to_ptr.vmem [resolvable:$false] %s1476_s29 }
  0x41   : > { %s1478_s30 = scalar_lea.vmem %s1477_s29, 6144  ;;  %p1479_p5 = scmp.lt.s32.totalorder %s1691_s19, %s1477_s29 }
  0x42   : > { %p1474_p4 = pnand %p1472_p1, %p1458_p6  ;;  %p1480_p11 = scmp.lt.s32.totalorder %s1478_s30, %s1471_s27 }
  0x44   : > { %p1475_p0 = pneg %p1474_p4  ;;  %p1481_p13 = por %p1480_p11, %p1479_p5 }
  0x46   : > { %p1482_p2 = pnand %p1481_p13, %p1475_p0 }
  0x48   : > { %1485 = shalt.err (!%p1482_p2)
}
  0x49   : > { %s1562_s3 = smov 64   ;;  %s1563_s25 = smov 4  }
  0x4a   : > { %1301 = dma.hbm_to_vmem [thread:$0]  (!%p1681_p3), %s1689_s26, 3072, %s1691_s19, %s1693_s4, %s1559_s8, %s1562_s3, %s1563_s25  }
  0x4b   : > { %p1892_p6 = scmp.ne.s32.totalorder %s1887_s23, 0 }
  0x4c   : > { %p1893_p12 = scmp.eq.s32.totalorder (!%p1892_p6), %s1606_s13, 0 }
  0x4d   : > { %145 = sbr.rel (%p1892_p6) target bundleno = 455 (0x1c7), region = 28 }
  0x54   : > { %1531 = dma.done.wait (%p1893_p12), [#allocation3], 4992   ;;  %p1894_p7 = pmov %p1893_p12 }
  0x55   : > { %s1729_s5 = sand.u32 1, %s1548_s10   ;;  %p1895_p3 = scmp.ne.s32.totalorder %s1884_s20, 0 }
  0x56   : > { %1533 = vsyncadd (%p1894_p7), [#allocation3], 4294962304  ;;  %s1284_s6 = smul.u32 192, %s1729_s5  ;;  %s152_s7 = scalar_lea.sflag [#allocation6], %s1729_s5 }
  0x58   : > { %s1733_s24 = scalar_lea.vmem [#allocation5], %s1284_s6 }
  0x59   : > { %1535 = dma.done.wait (%p1895_p3), %s152_s7, 3072  }
  0x5a   : > { %1537 = vsyncadd (%p1895_p3), %s152_s7, 4294964224  ;;  %v1564_v0 = vmov 0.0   ;;  %vm1565_vm0 = vmmov 0   ;;  %v1352_v1 = vld [vmem:[%s1733_s24 + $0x40] sm:$0xff]   ;;  %v1355_v4 = vld [vmem:[%s1733_s24 + $0x48] sm:$0xff]   ;;  %s1285_s20 = smul.u32 208, %s1729_s5 }
  0x5b   : > { %1215 = vmatprep.subr.bf16.mxu1 %v1564_v0  ;;  %1231 = vmatprep.mubr.msk.bf16.mxu1 %vm1565_vm0, %v1564_v0  ;;  %v1353_v2 = vld [vmem:[%s1733_s24] sm:$0xff]   ;;  %v1356_v5 = vld [vmem:[%s1733_s24 + $0x8] sm:$0xff]   ;;  %v1358_v7 = vld [vmem:[%s1733_s24 + $0x50] sm:$0xff]   ;;  %s1097_s8 = sshll.u32 %s1606_s13, 7  ;;  %s930_s13 = scalar_lea.sflag [#allocation4], %s1729_s5 }
  0x5c   : > { %1100 = vmatprep.subr.bf16.mxu0 %v1352_v1  ;;  %v1354_v3 = vld [vmem:[%s1733_s24 + $0x80] sm:$0xff]   ;;  %v1357_v6 = vld [vmem:[%s1733_s24 + $0x88] sm:$0xff]   ;;  %v1359_v8 = vld [vmem:[%s1733_s24 + $0x10] sm:$0xff]   ;;  %s1798_s23 = scalar_lea.vmem [#allocation7], %s1285_s20  ;;  %s1829_s14 = scalar_lea.hbm %s1878_s2, %s1097_s8 }
  0x5d   : > { %1101 = vmatpush3.bf16.msra.mxu0 %v1353_v2  ;;  %1216 = vmatpush3.bf16.msra.mxu1 %v1354_v3  ;;  %v1360_v9 = vld [vmem:[%s1733_s24 + $0x90] sm:$0xff]   ;;  %v1361_v10 = vld [vmem:[%s1733_s24 + $0x58] sm:$0xff]   ;;  %v1364_v13 = vld [vmem:[%s1733_s24 + $0x60] sm:$0xff]   ;;  %s942_s26 = sshll.u32 %s1798_s23, 4  ;;  %p1896_p9 = scmp.ne.s32.totalorder %s1885_s21, 0  ;;  %s1831_s26 = int_to_ptr.vmem [resolvable:$true] %s942_s26 }
  0x5e   : > { %1102 = vmatprep.subr.bf16.mxu0 %v1355_v4  ;;  %1217 = vmatprep.subr.bf16.mxu1 %v1564_v0  ;;  %v1362_v11 = vld [vmem:[%s1733_s24 + $0x18] sm:$0xff]   ;;  %v1365_v14 = vld [vmem:[%s1733_s24 + $0x20] sm:$0xff]   ;;  %v1367_v16 = vld [vmem:[%s1733_s24 + $0x68] sm:$0xff]   ;;  %s1486_s16 = scalar_lea.vmem %s1831_s26, 3328  ;;  %s1566_s17 = smov [#allocation7]  }
  0x5f   : > { %v1363_v12 = vld [vmem:[%s1733_s24 + $0x98] sm:$0xff]   ;;  %v1366_v15 = vld [vmem:[%s1733_s24 + $0xa0] sm:$0xff]   ;;  %v1368_v17 = vld [vmem:[%s1733_s24 + $0x28] sm:$0xff]   ;;  %p1487_p8 = scmp.ne.s32.totalorder %s1831_s26, %s1486_s16  ;;  %s1490_s27 = sshll.u32 %s1566_s17, 4  ;;  %s1491_s27 = int_to_ptr.vmem [resolvable:$false] %s1490_s27 }
  0x60   : > { %v1369_v18 = vld [vmem:[%s1733_s24 + $0xa8] sm:$0xff]   ;;  %v1370_v19 = vld [vmem:[%s1733_s24 + $0x70] sm:$0xff]   ;;  %v1373_v22 = vld [vmem:[%s1733_s24 + $0x78] sm:$0xff]   ;;  %s1492_s28 = scalar_lea.vmem %s1491_s27, 6656  ;;  %p1493_p4 = scmp.lt.s32.totalorder %s1831_s26, %s1491_s27 }
  0x61   : > { %1103 = vmatpush3.bf16.msra.mxu0 %v1356_v5  ;;  %1218 = vmatpush3.bf16.msra.mxu1 %v1357_v6  ;;  %v1371_v20 = vld [vmem:[%s1733_s24 + $0x30] sm:$0xff]   ;;  %v1378_v23 = vld [vmem:[#allocation2 + $0x4] ss:$12 sps:$4 sm:$0xff]   ;;  %v1384_v31 = vld [vmem:[#allocation2 + $0x34] ss:$12 sps:$4 sm:$0xff]   ;;  %p1488_p10 = pnand %p1487_p8, %p1896_p9  ;;  %p1494_p0 = scmp.lt.s32.totalorder %s1492_s28, %s1486_s16 }
  0x62   : > { %1104 = vmatprep.subr.bf16.mxu0 %v1358_v7  ;;  %1219 = vmatprep.subr.bf16.mxu1 %v1564_v0  ;;  %v1372_v21 = vld [vmem:[%s1733_s24 + $0xb0] sm:$0xff]   ;;  %v1374_v24 = vld [vmem:[%s1733_s24 + $0x38] sm:$0xff]   ;;  %v1382_v29 = vld [vmem:[#allocation2 + $0x18] ss:$12 sps:$4 sm:$0xff]  }
  0x63   : > { %661 = vmatprep.mubr.bf16.mxu0 %v1378_v23  ;;  %v1375_v25 = vld [vmem:[%s1733_s24 + $0xb8] sm:$0xff]   ;;  %v1376_v26 = vld [vmem:[#allocation2] ss:$12 sps:$4 sm:$0xff]   ;;  %v1380_v28 = vld [vmem:[#allocation2 + $0x1c] ss:$12 sps:$4 sm:$0xff]   ;;  %p1489_p1 = pneg %p1488_p10  ;;  %p1495_p5 = por %p1494_p0, %p1493_p4 }
  0x64   : > { %v1379_v27 = vld [vmem:[#allocation2 + $0x8] ss:$12 sps:$4 sm:$0xff]   ;;  %v1383_v30 = vld [vmem:[#allocation2 + $0x20] ss:$12 sps:$4 sm:$0xff]   ;;  %v1386_v32 = vld [vmem:[#allocation2 + $0x30] ss:$12 sps:$4 sm:$0xff]  }
  0x65   : > { %1105 = vmatpush3.bf16.msra.mxu0 %v1359_v8  ;;  %1220 = vmatpush3.bf16.msra.mxu1 %v1360_v9  ;;  %v1387_v33 = vld [vmem:[#allocation2 + $0x38] ss:$12 sps:$4 sm:$0xff]   ;;  %v1390_v35 = vld [vmem:[#allocation2 + $0x48] ss:$12 sps:$4 sm:$0xff]   ;;  %v1391_v36 = vld [vmem:[#allocation2 + $0x50] ss:$12 sps:$4 sm:$0xff]   ;;  %p1496_p11 = pnand %p1495_p5, %p1489_p1 }
  0x66   : > { %1106 = vmatprep.subr.bf16.mxu0 %v1361_v10  ;;  %1221 = vmatprep.subr.bf16.mxu1 %v1564_v0  ;;  %v1388_v34 = vld [vmem:[#allocation2 + $0x4c] ss:$12 sps:$4 sm:$0xff]   ;;  %v1392_v37 = vld [vmem:[#allocation2 + $0x64] ss:$12 sps:$4 sm:$0xff]   ;;  %v1395_v39 = vld [vmem:[#allocation2 + $0x68] ss:$12 sps:$4 sm:$0xff]  }
  0x67   : > { %v1394_v38 = vld [vmem:[#allocation2 + $0x60] ss:$12 sps:$4 sm:$0xff]   ;;  %v1396_v40 = vld [vmem:[#allocation2 + $0x7c] ss:$12 sps:$4 sm:$0xff]   ;;  %v1398_v41 = vld [vmem:[#allocation2 + $0x78] ss:$12 sps:$4 sm:$0xff]  }
  0x68   : > { %v1399_v42 = vld [vmem:[#allocation2 + $0x80] ss:$12 sps:$4 sm:$0xff]   ;;  %v1402_v44 = vld [vmem:[#allocation2 + $0x90] ss:$12 sps:$4 sm:$0xff]   ;;  %v1403_v45 = vld [vmem:[#allocation2 + $0x98] ss:$12 sps:$4 sm:$0xff]  }
  0x69   : > { %1107 = vmatpush3.bf16.msra.mxu0 %v1362_v11  ;;  %1222 = vmatpush3.bf16.msra.mxu1 %v1363_v12  ;;  %v1400_v43 = vld [vmem:[#allocation2 + $0x94] ss:$12 sps:$4 sm:$0xff]   ;;  %v1404_v46 = vld [vmem:[#allocation2 + $0xac] ss:$12 sps:$4 sm:$0xff]   ;;  %v1407_v48 = vld [vmem:[#allocation2 + $0xb0] ss:$12 sps:$4 sm:$0xff]  }
  0x6a   : > { %1108 = vmatprep.subr.bf16.mxu0 %v1364_v13  ;;  %1223 = vmatprep.subr.bf16.mxu1 %v1564_v0  ;;  %v1406_v47 = vld [vmem:[#allocation2 + $0xa8] ss:$12 sps:$4 sm:$0xff]   ;;  %v1408_v49 = vld [vmem:[#allocation2 + $0xc4] ss:$12 sps:$4 sm:$0xff]   ;;  %v1410_v50 = vld [vmem:[#allocation2 + $0xc0] ss:$12 sps:$4 sm:$0xff]  }
  0x6b   : > { %v1411_v51 = vld [vmem:[#allocation2 + $0xc8] ss:$12 sps:$4 sm:$0xff]   ;;  %v1414_v53 = vld [vmem:[#allocation2 + $0xd8] ss:$12 sps:$4 sm:$0xff]   ;;  %v1415_v54 = vld [vmem:[#allocation2 + $0xe0] ss:$12 sps:$4 sm:$0xff]  }
  0x6c   : > { %v1412_v52 = vld [vmem:[#allocation2 + $0xdc] ss:$12 sps:$4 sm:$0xff]   ;;  %v1416_v55 = vld [vmem:[#allocation2 + $0xf4] ss:$12 sps:$4 sm:$0xff]   ;;  %v1419_v57 = vld [vmem:[#allocation2 + $0xf8] ss:$12 sps:$4 sm:$0xff]  }
  0x6d   : > { %1109 = vmatpush3.bf16.msra.mxu0 %v1365_v14  ;;  %1224 = vmatpush3.bf16.msra.mxu1 %v1366_v15  ;;  %v1418_v56 = vld [vmem:[#allocation2 + $0xf0] ss:$12 sps:$4 sm:$0xff]   ;;  %v1420_v58 = vld [vmem:[#allocation2 + $0x10c] ss:$12 sps:$4 sm:$0xff]   ;;  %v1422_v59 = vld [vmem:[#allocation2 + $0x108] ss:$12 sps:$4 sm:$0xff]  }
  0x6e   : > { %1110 = vmatprep.subr.bf16.mxu0 %v1367_v16  ;;  %1225 = vmatprep.subr.bf16.mxu1 %v1564_v0  ;;  %v1423_v60 = vld [vmem:[#allocation2 + $0x110] ss:$12 sps:$4 sm:$0xff]   ;;  %v1426_v62 = vld [vmem:[#allocation2 + $0x120] ss:$12 sps:$4 sm:$0xff]   ;;  %v1427_v63 = vld [vmem:[#allocation2 + $0x128] ss:$12 sps:$4 sm:$0xff]  }
  0x6f   : > { %v1424_v61 = vld [vmem:[#allocation2 + $0x124] ss:$12 sps:$4 sm:$0xff]  }
  0x71   : > { %1111 = vmatpush3.bf16.msra.mxu0 %v1368_v17  ;;  %1226 = vmatpush3.bf16.msra.mxu1 %v1369_v18 }
  0x72   : > { %1112 = vmatprep.subr.bf16.mxu0 %v1370_v19  ;;  %1227 = vmatprep.subr.bf16.mxu1 %v1564_v0 }
  0x75   : > { %1113 = vmatpush3.bf16.msra.mxu0 %v1371_v20  ;;  %1228 = vmatpush3.bf16.msra.mxu1 %v1372_v21 }
  0x76   : > { %1114 = vmatprep.subr.bf16.mxu0 %v1373_v22  ;;  %1229 = vmatprep.subr.bf16.mxu1 %v1564_v0 }
  0x79   : > { %1115 = vmatpush3.bf16.msra.mxu0 %v1374_v24  ;;  %1230 = vmatpush3.bf16.msra.mxu1 %v1375_v25 }
  0x7c   : > { %662 = vmatmul.mubr.bf16.vlgmr.msra.gmra.mrb[0].mxu0 %v1376_v26  ;;  %1232 = vmatmul.mubr.bf16.vlgmr.msra.gmra.mrb[0].mxu1 %v1379_v27 }
  0x7d   : > { %669 = vmatprep.mubr.bf16.mxu0 %v1380_v28  ;;  %1235 = vmatprep.mubr.msk.bf16.mxu1 %vm1565_vm0, %v1564_v0 }
  0x84   : > { %670 = vmatmul.mubr.bf16.gmra.mrb[4].mxu0 %v1382_v29  ;;  %1236 = vmatmul.mubr.bf16.gmra.mrb[4].mxu1 %v1383_v30 }
  0x85   : > { %677 = vmatprep.mubr.bf16.mxu0 %v1384_v31  ;;  %1239 = vmatprep.mubr.msk.bf16.mxu1 %vm1565_vm0, %v1564_v0 }
  0x8c   : > { %678 = vmatmul.mubr.bf16.gmra.mrb[8].mxu0 %v1386_v32  ;;  %1240 = vmatmul.mubr.bf16.gmra.mrb[8].mxu1 %v1387_v33 }
  0x8d   : > { %685 = vmatprep.mubr.bf16.mxu0 %v1388_v34  ;;  %1243 = vmatprep.mubr.msk.bf16.mxu1 %vm1565_vm0, %v1564_v0 }
  0x94   : > { %686 = vmatmul.mubr.bf16.gmra.mrb[12].mxu0 %v1390_v35  ;;  %1244 = vmatmul.mubr.bf16.gmra.mrb[12].mxu1 %v1391_v36 }
  0x95   : > { %693 = vmatprep.mubr.bf16.mxu0 %v1392_v37  ;;  %1247 = vmatprep.mubr.msk.bf16.mxu1 %vm1565_vm0, %v1564_v0 }
  0x9c   : > { %694 = vmatmul.mubr.bf16.gmra.mrb[16].mxu0 %v1394_v38  ;;  %1248 = vmatmul.mubr.bf16.gmra.mrb[16].mxu1 %v1395_v39 }
  0x9d   : > { %701 = vmatprep.mubr.bf16.mxu0 %v1396_v40  ;;  %1251 = vmatprep.mubr.msk.bf16.mxu1 %vm1565_vm0, %v1564_v0 }
  0xa4   : > { %702 = vmatmul.mubr.bf16.gmra.mrb[20].mxu0 %v1398_v41  ;;  %1252 = vmatmul.mubr.bf16.gmra.mrb[20].mxu1 %v1399_v42 }
  0xa5   : > { %709 = vmatprep.mubr.bf16.mxu0 %v1400_v43  ;;  %1255 = vmatprep.mubr.msk.bf16.mxu1 %vm1565_vm0, %v1564_v0 }
  0xac   : > { %710 = vmatmul.mubr.bf16.gmra.mrb[24].mxu0 %v1402_v44  ;;  %1256 = vmatmul.mubr.bf16.gmra.mrb[24].mxu1 %v1403_v45 }
  0xad   : > { %717 = vmatprep.mubr.bf16.mxu0 %v1404_v46  ;;  %1259 = vmatprep.mubr.msk.bf16.mxu1 %vm1565_vm0, %v1564_v0 }
  0xb4   : > { %718 = vmatmul.mubr.bf16.gmra.mrb[28].mxu0 %v1406_v47  ;;  %1260 = vmatmul.mubr.bf16.gmra.mrb[28].mxu1 %v1407_v48 }
  0xb5   : > { %725 = vmatprep.mubr.bf16.mxu0 %v1408_v49  ;;  %1263 = vmatprep.mubr.msk.bf16.mxu1 %vm1565_vm0, %v1564_v0 }
  0xbc   : > { %726 = vmatmul.mubr.bf16.gmra.mrb[32].mxu0 %v1410_v50  ;;  %1264 = vmatmul.mubr.bf16.gmra.mrb[32].mxu1 %v1411_v51 }
  0xbd   : > { %733 = vmatprep.mubr.bf16.mxu0 %v1412_v52  ;;  %1267 = vmatprep.mubr.msk.bf16.mxu1 %vm1565_vm0, %v1564_v0 }
  0xc4   : > { %734 = vmatmul.mubr.bf16.gmra.mrb[36].mxu0 %v1414_v53  ;;  %1268 = vmatmul.mubr.bf16.gmra.mrb[36].mxu1 %v1415_v54 }
  0xc5   : > { %741 = vmatprep.mubr.bf16.mxu0 %v1416_v55  ;;  %1271 = vmatprep.mubr.msk.bf16.mxu1 %vm1565_vm0, %v1564_v0 }
  0xcc   : > { %742 = vmatmul.mubr.bf16.gmra.mrb[40].mxu0 %v1418_v56  ;;  %1272 = vmatmul.mubr.bf16.gmra.mrb[40].mxu1 %v1419_v57 }
  0xcd   : > { %749 = vmatprep.mubr.bf16.mxu0 %v1420_v58  ;;  %1275 = vmatprep.mubr.msk.bf16.mxu1 %vm1565_vm0, %v1564_v0 }
  0xd4   : > { %750 = vmatmul.mubr.bf16.gmra.mrb[44].mxu0 %v1422_v59  ;;  %1276 = vmatmul.mubr.bf16.gmra.mrb[44].mxu1 %v1423_v60 }
  0xd5   : > { %757 = vmatprep.mubr.bf16.mxu0 %v1424_v61  ;;  %1279 = vmatprep.mubr.msk.bf16.mxu1 %vm1565_vm0, %v1564_v0 }
  0xdc   : > { %758 = vmatmul.mubr.bf16.gmra.mrb[48].mxu0 %v1426_v62  ;;  %1280 = vmatmul.mubr.bf16.gmra.mrb[48].mxu1 %v1427_v63 }
 0x14f   : > { %v1116_v1 = vpop.f32.mrb[0].mxu0  ;;  %v800_v2 = vpop.f32.mrb[0].mxu1 }
 0x150   : > { %v1117_v3 = vpop.f32.mrb[1].mxu0  ;;  %v1233_v5 = vpop.f32.mrb[1].mxu1 }
 0x151   : > { %v1118_v4 = vadd.f32 %v1117_v3, %v1116_v1  ;;  %v1119_v6 = vpop.f32.mrb[2].mxu0  ;;  %v803_v7 = vpop.f32.mrb[2].mxu1 }
 0x152   : > { %v1120_v8 = vpop.f32.mrb[3].mxu0  ;;  %v1234_v11 = vpop.f32.mrb[3].mxu1 }
 0x153   : > { %v801_v9 = vadd.f32 %v1118_v4, %v800_v2  ;;  %v1121_v10 = vadd.f32 %v1120_v8, %v1119_v6 }
 0x155   : > { %903 = vst [vmem:[%s1798_s23] sm:$0xff] %v801_v9  ;;  %v804_v0 = vadd.f32 %v1121_v10, %v803_v7 }
 0x157   : > { %904 = vst [vmem:[%s1798_s23 + $0x8] sm:$0xff] %v804_v0  ;;  %v1122_v12 = vpop.f32.mrb[4].mxu0  ;;  %v808_v13 = vpop.f32.mrb[4].mxu1 }
 0x158   : > { %v1123_v14 = vpop.f32.mrb[5].mxu0  ;;  %v1237_v16 = vpop.f32.mrb[5].mxu1 }
 0x159   : > { %v1124_v15 = vadd.f32 %v1123_v14, %v1122_v12  ;;  %v1125_v17 = vpop.f32.mrb[6].mxu0  ;;  %v811_v18 = vpop.f32.mrb[6].mxu1 }
 0x15a   : > { %v1126_v19 = vpop.f32.mrb[7].mxu0  ;;  %v1238_v22 = vpop.f32.mrb[7].mxu1 }
 0x15b   : > { %v809_v20 = vadd.f32 %v1124_v15, %v808_v13  ;;  %v1127_v21 = vadd.f32 %v1126_v19, %v1125_v17 }
 0x15d   : > { %905 = vst [vmem:[%s1798_s23 + $0x10] sm:$0xff] %v809_v20  ;;  %v812_v23 = vadd.f32 %v1127_v21, %v811_v18 }
 0x15f   : > { %906 = vst [vmem:[%s1798_s23 + $0x18] sm:$0xff] %v812_v23  ;;  %v1128_v24 = vpop.f32.mrb[8].mxu0  ;;  %v816_v25 = vpop.f32.mrb[8].mxu1 }
 0x160   : > { %v1129_v26 = vpop.f32.mrb[9].mxu0  ;;  %v1241_v28 = vpop.f32.mrb[9].mxu1 }
 0x161   : > { %v1130_v27 = vadd.f32 %v1129_v26, %v1128_v24  ;;  %v1131_v29 = vpop.f32.mrb[10].mxu0  ;;  %v819_v30 = vpop.f32.mrb[10].mxu1 }
 0x162   : > { %v1132_v31 = vpop.f32.mrb[11].mxu0  ;;  %v1242_v34 = vpop.f32.mrb[11].mxu1 }
 0x163   : > { %v817_v32 = vadd.f32 %v1130_v27, %v816_v25  ;;  %v1133_v33 = vadd.f32 %v1132_v31, %v1131_v29 }
 0x165   : > { %907 = vst [vmem:[%s1798_s23 + $0x20] sm:$0xff] %v817_v32  ;;  %v820_v35 = vadd.f32 %v1133_v33, %v819_v30 }
 0x167   : > { %908 = vst [vmem:[%s1798_s23 + $0x28] sm:$0xff] %v820_v35  ;;  %v1134_v36 = vpop.f32.mrb[12].mxu0  ;;  %v824_v37 = vpop.f32.mrb[12].mxu1 }
 0x168   : > { %v1135_v38 = vpop.f32.mrb[13].mxu0  ;;  %v1245_v40 = vpop.f32.mrb[13].mxu1 }
 0x169   : > { %v1136_v39 = vadd.f32 %v1135_v38, %v1134_v36  ;;  %v1137_v41 = vpop.f32.mrb[14].mxu0  ;;  %v827_v42 = vpop.f32.mrb[14].mxu1 }
 0x16a   : > { %v1138_v43 = vpop.f32.mrb[15].mxu0  ;;  %v1246_v46 = vpop.f32.mrb[15].mxu1 }
 0x16b   : > { %v825_v44 = vadd.f32 %v1136_v39, %v824_v37  ;;  %v1139_v45 = vadd.f32 %v1138_v43, %v1137_v41 }
 0x16d   : > { %909 = vst [vmem:[%s1798_s23 + $0x30] sm:$0xff] %v825_v44  ;;  %v828_v47 = vadd.f32 %v1139_v45, %v827_v42 }
 0x16f   : > { %910 = vst [vmem:[%s1798_s23 + $0x38] sm:$0xff] %v828_v47  ;;  %v1140_v48 = vpop.f32.mrb[16].mxu0  ;;  %v832_v49 = vpop.f32.mrb[16].mxu1 }
 0x170   : > { %v1141_v50 = vpop.f32.mrb[17].mxu0  ;;  %v1249_v52 = vpop.f32.mrb[17].mxu1 }
 0x171   : > { %v1142_v51 = vadd.f32 %v1141_v50, %v1140_v48  ;;  %v1143_v53 = vpop.f32.mrb[18].mxu0  ;;  %v835_v54 = vpop.f32.mrb[18].mxu1 }
 0x172   : > { %v1144_v55 = vpop.f32.mrb[19].mxu0  ;;  %v1250_v58 = vpop.f32.mrb[19].mxu1 }
 0x173   : > { %v833_v56 = vadd.f32 %v1142_v51, %v832_v49  ;;  %v1145_v57 = vadd.f32 %v1144_v55, %v1143_v53 }
 0x175   : > { %911 = vst [vmem:[%s1798_s23 + $0x40] sm:$0xff] %v833_v56  ;;  %v836_v59 = vadd.f32 %v1145_v57, %v835_v54 }
 0x177   : > { %912 = vst [vmem:[%s1798_s23 + $0x48] sm:$0xff] %v836_v59  ;;  %v1146_v60 = vpop.f32.mrb[20].mxu0  ;;  %v840_v61 = vpop.f32.mrb[20].mxu1 }
 0x178   : > { %v1147_v62 = vpop.f32.mrb[21].mxu0  ;;  %v1253_v1 = vpop.f32.mrb[21].mxu1 }
 0x179   : > { %v1148_v63 = vadd.f32 %v1147_v62, %v1146_v60  ;;  %v1149_v2 = vpop.f32.mrb[22].mxu0  ;;  %v843_v3 = vpop.f32.mrb[22].mxu1 }
 0x17a   : > { %v1150_v4 = vpop.f32.mrb[23].mxu0  ;;  %v1254_v7 = vpop.f32.mrb[23].mxu1 }
 0x17b   : > { %v841_v5 = vadd.f32 %v1148_v63, %v840_v61  ;;  %v1151_v6 = vadd.f32 %v1150_v4, %v1149_v2 }
 0x17d   : > { %913 = vst [vmem:[%s1798_s23 + $0x50] sm:$0xff] %v841_v5  ;;  %v844_v8 = vadd.f32 %v1151_v6, %v843_v3 }
 0x17f   : > { %914 = vst [vmem:[%s1798_s23 + $0x58] sm:$0xff] %v844_v8  ;;  %v1152_v9 = vpop.f32.mrb[24].mxu0  ;;  %v848_v10 = vpop.f32.mrb[24].mxu1 }
 0x180   : > { %v1153_v11 = vpop.f32.mrb[25].mxu0  ;;  %v1257_v12 = vpop.f32.mrb[25].mxu1 }
 0x181   : > { %v1154_v0 = vadd.f32 %v1153_v11, %v1152_v9  ;;  %v1155_v13 = vpop.f32.mrb[26].mxu0  ;;  %v851_v14 = vpop.f32.mrb[26].mxu1 }
 0x182   : > { %v1156_v15 = vpop.f32.mrb[27].mxu0  ;;  %v1258_v18 = vpop.f32.mrb[27].mxu1 }
 0x183   : > { %v849_v16 = vadd.f32 %v1154_v0, %v848_v10  ;;  %v1157_v17 = vadd.f32 %v1156_v15, %v1155_v13 }
 0x185   : > { %915 = vst [vmem:[%s1798_s23 + $0x60] sm:$0xff] %v849_v16  ;;  %v852_v19 = vadd.f32 %v1157_v17, %v851_v14 }
 0x187   : > { %916 = vst [vmem:[%s1798_s23 + $0x68] sm:$0xff] %v852_v19  ;;  %v1158_v20 = vpop.f32.mrb[28].mxu0  ;;  %v856_v21 = vpop.f32.mrb[28].mxu1 }
 0x188   : > { %v1159_v22 = vpop.f32.mrb[29].mxu0  ;;  %v1261_v24 = vpop.f32.mrb[29].mxu1 }
 0x189   : > { %v1160_v23 = vadd.f32 %v1159_v22, %v1158_v20  ;;  %v1161_v25 = vpop.f32.mrb[30].mxu0  ;;  %v859_v26 = vpop.f32.mrb[30].mxu1 }
 0x18a   : > { %v1162_v27 = vpop.f32.mrb[31].mxu0  ;;  %v1262_v30 = vpop.f32.mrb[31].mxu1 }
 0x18b   : > { %v857_v28 = vadd.f32 %v1160_v23, %v856_v21  ;;  %v1163_v29 = vadd.f32 %v1162_v27, %v1161_v25 }
 0x18d   : > { %917 = vst [vmem:[%s1798_s23 + $0x70] sm:$0xff] %v857_v28  ;;  %v860_v31 = vadd.f32 %v1163_v29, %v859_v26 }
 0x18f   : > { %918 = vst [vmem:[%s1798_s23 + $0x78] sm:$0xff] %v860_v31  ;;  %v1164_v32 = vpop.f32.mrb[32].mxu0  ;;  %v864_v33 = vpop.f32.mrb[32].mxu1 }
 0x190   : > { %v1165_v34 = vpop.f32.mrb[33].mxu0  ;;  %v1265_v36 = vpop.f32.mrb[33].mxu1 }
 0x191   : > { %v1166_v35 = vadd.f32 %v1165_v34, %v1164_v32  ;;  %v1167_v37 = vpop.f32.mrb[34].mxu0  ;;  %v867_v38 = vpop.f32.mrb[34].mxu1 }
 0x192   : > { %v1168_v39 = vpop.f32.mrb[35].mxu0  ;;  %v1266_v42 = vpop.f32.mrb[35].mxu1 }
 0x193   : > { %v865_v40 = vadd.f32 %v1166_v35, %v864_v33  ;;  %v1169_v41 = vadd.f32 %v1168_v39, %v1167_v37 }
 0x195   : > { %919 = vst [vmem:[%s1798_s23 + $0x80] sm:$0xff] %v865_v40  ;;  %v868_v43 = vadd.f32 %v1169_v41, %v867_v38 }
 0x197   : > { %920 = vst [vmem:[%s1798_s23 + $0x88] sm:$0xff] %v868_v43  ;;  %v1170_v44 = vpop.f32.mrb[36].mxu0  ;;  %v872_v45 = vpop.f32.mrb[36].mxu1 }
 0x198   : > { %v1171_v46 = vpop.f32.mrb[37].mxu0  ;;  %v1269_v48 = vpop.f32.mrb[37].mxu1 }
 0x199   : > { %v1172_v47 = vadd.f32 %v1171_v46, %v1170_v44  ;;  %v1173_v49 = vpop.f32.mrb[38].mxu0  ;;  %v875_v50 = vpop.f32.mrb[38].mxu1 }
 0x19a   : > { %v1174_v51 = vpop.f32.mrb[39].mxu0  ;;  %v1270_v54 = vpop.f32.mrb[39].mxu1 }
 0x19b   : > { %v873_v52 = vadd.f32 %v1172_v47, %v872_v45  ;;  %v1175_v53 = vadd.f32 %v1174_v51, %v1173_v49 }
 0x19d   : > { %921 = vst [vmem:[%s1798_s23 + $0x90] sm:$0xff] %v873_v52  ;;  %v876_v55 = vadd.f32 %v1175_v53, %v875_v50 }
 0x19f   : > { %922 = vst [vmem:[%s1798_s23 + $0x98] sm:$0xff] %v876_v55  ;;  %v1176_v56 = vpop.f32.mrb[40].mxu0  ;;  %v880_v57 = vpop.f32.mrb[40].mxu1 }
 0x1a0   : > { %v1177_v58 = vpop.f32.mrb[41].mxu0  ;;  %v1273_v60 = vpop.f32.mrb[41].mxu1 }
 0x1a1   : > { %v1178_v59 = vadd.f32 %v1177_v58, %v1176_v56  ;;  %v1179_v61 = vpop.f32.mrb[42].mxu0  ;;  %v883_v62 = vpop.f32.mrb[42].mxu1 }
 0x1a2   : > { %v1180_v63 = vpop.f32.mrb[43].mxu0  ;;  %v1274_v3 = vpop.f32.mrb[43].mxu1 }
 0x1a3   : > { %v881_v1 = vadd.f32 %v1178_v59, %v880_v57  ;;  %v1181_v2 = vadd.f32 %v1180_v63, %v1179_v61 }
 0x1a5   : > { %923 = vst [vmem:[%s1798_s23 + $0xa0] sm:$0xff] %v881_v1  ;;  %v884_v4 = vadd.f32 %v1181_v2, %v883_v62 }
 0x1a7   : > { %924 = vst [vmem:[%s1798_s23 + $0xa8] sm:$0xff] %v884_v4  ;;  %v1182_v5 = vpop.f32.mrb[44].mxu0  ;;  %v888_v6 = vpop.f32.mrb[44].mxu1 }
 0x1a8   : > { %v1183_v7 = vpop.f32.mrb[45].mxu0  ;;  %v1277_v9 = vpop.f32.mrb[45].mxu1 }
 0x1a9   : > { %v1184_v8 = vadd.f32 %v1183_v7, %v1182_v5  ;;  %v1185_v10 = vpop.f32.mrb[46].mxu0  ;;  %v891_v11 = vpop.f32.mrb[46].mxu1 }
 0x1aa   : > { %v1186_v0 = vpop.f32.mrb[47].mxu0  ;;  %v1278_v14 = vpop.f32.mrb[47].mxu1 }
 0x1ab   : > { %v889_v12 = vadd.f32 %v1184_v8, %v888_v6  ;;  %v1187_v13 = vadd.f32 %v1186_v0, %v1185_v10 }
 0x1ad   : > { %925 = vst [vmem:[%s1798_s23 + $0xb0] sm:$0xff] %v889_v12  ;;  %v892_v15 = vadd.f32 %v1187_v13, %v891_v11 }
 0x1af   : > { %926 = vst [vmem:[%s1798_s23 + $0xb8] sm:$0xff] %v892_v15  ;;  %v1188_v16 = vpop.f32.mrb[48].mxu0  ;;  %v896_v17 = vpop.f32.mrb[48].mxu1 }
 0x1b0   : > { %v1189_v18 = vpop.f32.mrb[49].mxu0  ;;  %v1281_v20 = vpop.f32.mrb[49].mxu1 }
 0x1b1   : > { %v1190_v19 = vadd.f32 %v1189_v18, %v1188_v16  ;;  %v1191_v21 = vpop.f32.mrb[50].mxu0  ;;  %v899_v22 = vpop.f32.mrb[50].mxu1 }
 0x1b2   : > { %v1192_v23 = vpop.f32.mrb[51].mxu0  ;;  %v1282_v26 = vpop.f32.mrb[51].mxu1 }
 0x1b3   : > { %v897_v24 = vadd.f32 %v1190_v19, %v896_v17  ;;  %v1193_v25 = vadd.f32 %v1192_v23, %v1191_v21 }
 0x1b5   : > { %927 = vst [vmem:[%s1798_s23 + $0xc0] sm:$0xff] %v897_v24  ;;  %v900_v27 = vadd.f32 %v1193_v25, %v899_v22 }
 0x1b7   : > { %928 = vst [vmem:[%s1798_s23 + $0xc8] sm:$0xff] %v900_v27 }
 0x1b8   : > { %1499 = shalt.err (!%p1496_p11)
}
 0x1b9   : > { %s1500_s29 = scalar_lea.hbm %s1829_s14, 3328  ;;  %s1504_s25 = scalar_lea.hbm %s1878_s2, 9984 }
 0x1ba   : > { %p1501_p13 = scmp.ne.s32.totalorder %s1829_s14, %s1500_s29  ;;  %p1505_p12 = scmp.lt.u32.totalorder %s1829_s14, %s1878_s2 }
 0x1bb   : > { %p1506_p7 = scmp.lt.u32.totalorder %s1504_s25, %s1500_s29  ;;  %p1508_p8 = scmp.lt.u32.totalorder %s1500_s29, %s1829_s14 }
 0x1bc   : > { %p1502_p2 = pnand %p1501_p13, %p1896_p9 }
 0x1bd   : > { %p1507_p3 = por %p1506_p7, %p1505_p12 }
 0x1be   : > { %p1503_p6 = pneg %p1502_p2 }
 0x1bf   : > { %p1509_p10 = por %p1508_p8, %p1507_p3 }
 0x1c1   : > { %p1510_p1 = pnand %p1509_p10, %p1503_p6 }
 0x1c3   : > { %1513 = shalt.err (!%p1510_p1)
}
 0x1c4   : > { %s1567_s24 = smov 128   ;;  %s1568_s20 = smov 384  }
 0x1c5   : > { %s1569_s23 = smov 8  }
 0x1c6   : > { %1292 = dma.vmem_to_hbm [thread:$0]  (%p1896_p9), %s1831_s26, 3328, %s1829_s14, %s930_s13, %s1567_s24, %s1568_s20, %s1569_s23  }
 0x1c7 PF: > { %p1309_p4 = scmp.ge.s32.totalorder %s1556_s12, 2  ;;  %s957_s8 = sand.u32 1, %s1544_s9  }
 0x1c8   : > { %p1897_p0 = scmp.ne.s32.totalorder %s1886_s22, 0  ;;  %s958_s19 = scalar_lea.sflag [#allocation4], %s957_s8 }
 0x1ca   : > { %p1303_p5 = pnand %p1309_p4, %p1897_p0 }
 0x1cc   : > { %1539 = dma.done.wait (!%p1303_p5), %s958_s19, 3328  }
 0x1cd   : > { %1541 = vsyncadd (!%p1303_p5), %s958_s19, 4294963968  ;;  %p16_p11 = scmp.ge.s32.totalorder %s1610_s15, 5   ;;  %s1898_s9 = smov %s1548_s10 }
 0x1ce   : > { %s1899_s10 = smov %s1552_s11  ;;  %s1900_s11 = smov %s1622_s18 }
 0x1cf   : > { %s1901_s12 = smov %s1610_s15  ;;  %18 = sbr.rel (!%p16_p11) target bundleno = 6 (0x6), region = 78 }
 0x1d6   :  { %963 = vsyncpa [#allocation3], 1 }
 0x1d7   :  { %965 = vsyncpa [#allocation3 + $0x1], 1 }
 0x1d8   :  { %966 = vsyncpa [#allocation6], 1 }
 0x1d9   :  { %968 = vsyncpa [#allocation6 + $0x1], 1 }
 0x1da   :  { %969 = vsyncpa [#allocation4], 1 }
 0x1db   :  { %971 = vsyncpa [#allocation4 + $0x1], 1 }

</bundles_post_ra>
